<compile_context>
chip_gen: v7x
topology: tpu7x:2x2x1
jax: 0.10.0
libtpu: 0.0.40
codegen_flags: <defaults>
</compile_context>

<pallas_src>
from functools import partial

import jax
import jax.numpy as jnp
from jax.experimental import pallas as pl
from jax.experimental.pallas import tpu as pltpu


def _round_up(x: int, m: int) -> int:
    return ((x + m - 1) // m) * m


def _choose_tm(m: int, *, max_rows: int = 512, num_tc: int = 2) -> int:
    """Pick a row-tile size.

    Goals: (a) at least `num_tc` grid steps when M allows it (so v7x's two
    TensorCores both get work under dimension_semantics=("parallel",)),
    (b) tiles <= max_rows, (c) minimal zero-padding waste, (d) multiple of 8
    (f32 sublane constraint).
    """
    m8 = _round_up(max(m, 8), 8)
    if m8 <= 8:
        return 8
    n_tiles = max(num_tc, pl.cdiv(m8, max_rows))
    return _round_up(pl.cdiv(m8, n_tiles), 8)


def _mlp_fused_kernel(x_ref, *refs, num_layers: int):
    """Fused MLP on one row tile.

    x_ref:  (tm, K0)          activation row tile
    refs:   w0, b0, ..., w_{L-1}, b_{L-1}, o_ref
            w_l: (K_l, N_l) full weight (bf16 or f32), b_l: (1, N_l) f32 bias
    o_ref:  (tm, N_pad)       lane-dense output tile
    """
    o_ref = refs[-1]
    wb = refs[:-1]

    h = x_ref[...].astype(jnp.float32)
    for layer in range(num_layers):
        w = wb[2 * layer][...]
        b = wb[2 * layer + 1][...]          # f32 (1, N) -> broadcasts over rows
        # MXU takes operands in the weights' (pre-cast) dtype; accumulate f32.
        h = jnp.dot(h.astype(w.dtype), w,
                    preferred_element_type=jnp.float32) + b
        if layer < num_layers - 1:
            h = jnp.maximum(h, 0.0)
    o_ref[...] = h.astype(o_ref.dtype)


def prepare_mlp_params(params, *, mxu_dtype=jnp.bfloat16, lane: int = 128):
    """One-time param prep (hoisted out of the per-call forward path).

    params: list of (W[in_dim, out_dim], b[out_dim]) per layer.
    Returns (prepared, out_dim) where prepared is a list of
    (W[in, out_padded] in `mxu_dtype`, b[1, out_padded] in f32); only the
    LAST layer's output dim is padded up to a multiple of `lane` so the
    kernel's HBM store is lane-dense (unmasked vst).
    """
    num_layers = len(params)
    out_dim = params[-1][0].shape[1]
    n_pad = _round_up(out_dim, lane)
    prepared = []
    for i, (w, b) in enumerate(params):
        if i == num_layers - 1 and n_pad != out_dim:
            w = jnp.pad(w, ((0, 0), (0, n_pad - out_dim)))
            b = jnp.pad(b, ((0, n_pad - out_dim),))
        prepared.append((jnp.asarray(w, mxu_dtype),
                         jnp.asarray(b, jnp.float32).reshape(1, -1)))
    return prepared, out_dim


def mlp_forward(x, prepared, out_dim, *, tm=None, out_dtype=None):
    """Forward pass matching PyTorch MLP: ReLU after every layer but the last.

    `prepared` comes from prepare_mlp_params.  Call this under jax.jit
    together with its consumer so the trailing slice fuses.
    """
    lead_shape = x.shape[:-1]
    k0 = x.shape[-1]
    x2d = x.reshape(-1, k0)
    m = x2d.shape[0]
    num_layers = len(prepared)
    n_pad = prepared[-1][0].shape[1]
    if out_dtype is None:
        out_dtype = x.dtype

    # Row tile: >=2 grid steps when possible (v7x megacore), <=512 rows,
    # multiple of 8, minimal padding waste.  Ragged M -> zero-pad rows.
    if tm is None:
        tm = _choose_tm(m)
    else:
        tm = _round_up(max(int(tm), 8), 8)   # validate caller-provided tm
    m_pad = _round_up(m, tm)
    if m_pad != m:
        x2d = jnp.pad(x2d, ((0, m_pad - m), (0, 0)))

    in_specs = [pl.BlockSpec((tm, k0), lambda i: (i, 0))]
    flat_args = [x2d]
    for w, b in prepared:
        # Constant full-extent blocks (index_map is (0,0) for every step).
        # First knob when widths grow: pipeline_mode=pl.Buffered(1) to drop
        # the second VMEM copy of each weight/bias (negligible at these sizes).
        in_specs.append(pl.BlockSpec(w.shape, lambda i: (0, 0)))
        in_specs.append(pl.BlockSpec(b.shape, lambda i: (0, 0)))
        flat_args.extend([w, b])

    kernel = partial(_mlp_fused_kernel, num_layers=num_layers)
    out = pl.pallas_call(
        kernel,
        out_shape=jax.ShapeDtypeStruct((m_pad, n_pad), out_dtype),
        grid_spec=pltpu.PrefetchScalarGridSpec(
            num_scalar_prefetch=0,
            grid=(m_pad // tm,),
            in_specs=in_specs,
            out_specs=pl.BlockSpec((tm, n_pad), lambda i: (i, 0)),
        ),
        compiler_params=pltpu.CompilerParams(
            dimension_semantics=("parallel",)),
    )(*flat_args)

    # Under jit this slice fuses with the surrounding program (no extra
    # dispatch / HBM round trip for the padded slab).
    out = out[:m, :out_dim]
    return out.reshape(*lead_shape, out_dim)


def init_mlp_params(key, input_dim, hidden_dim, output_dim, num_layers):
    """Deterministic init matching nn.Linear shapes.

    Returns list of (W[in, out], b[out]) per layer (W already transposed
    relative to PyTorch's [out, in] convention).
    """
    h = [hidden_dim] * (num_layers - 1)
    dims_in = [input_dim] + h
    dims_out = h + [output_dim]
    params = []
    for n_in, n_out in zip(dims_in, dims_out):
        key, kw, kb = jax.random.split(key, 3)
        bound = 1.0 / (n_in ** 0.5)  # PyTorch nn.Linear default uniform bound
        w = jax.random.uniform(kw, (n_in, n_out), jnp.float32, -bound, bound)
        b = jax.random.uniform(kb, (n_out,), jnp.float32, -bound, bound)
        params.append((w, b))
    return params


def mlp_reference(x, params, mxu_dtype=None):
    """Pure-JAX reference.  mxu_dtype=None -> f32 (PyTorch semantics);
    mxu_dtype=jnp.bfloat16 -> numerics-matched to the kernel's MXU path."""
    num_layers = len(params)
    h = x.astype(jnp.float32)
    for i, (w, b) in enumerate(params):
        if mxu_dtype is None:
            h = h @ w + b
        else:
            h = jnp.dot(h.astype(mxu_dtype), w.astype(mxu_dtype),
                        preferred_element_type=jnp.float32) + b
        if i < num_layers - 1:
            h = jnp.maximum(h, 0.0)
    return h


if __name__ == "__main__":
    # Small shapes consistent with the DETR MLP head:
    # batch=2, seq=8 queries, input_dim=32, hidden_dim=32, output_dim=4, 3 layers.
    key = jax.random.PRNGKey(0)
    kx, kp = jax.random.split(key)

    input_dim, hidden_dim, output_dim, num_layers = 32, 32, 4, 3
    x = jax.random.normal(kx, (2, 8, input_dim), jnp.float32)
    params = init_mlp_params(kp, input_dim, hidden_dim, output_dim, num_layers)

    # One-time param prep (pad last layer to 128 lanes, bias -> (1, N), bf16 W).
    prepared, out_dim = prepare_mlp_params(params, mxu_dtype=jnp.bfloat16)

    # Jit the whole forward so the trailing slice fuses with the kernel call.
    fwd = jax.jit(lambda xx: mlp_forward(xx, prepared, out_dim))
    out = jax.block_until_ready(fwd(x))
    assert out.shape == (2, 8, output_dim), out.shape

    # Tight check against a numerics-matched (bf16-operand MXU) reference.
    ref_matched = mlp_reference(x, params, mxu_dtype=jnp.bfloat16)
    assert jnp.allclose(out, ref_matched, atol=1e-3, rtol=1e-3), \
        "mismatch vs bf16-matched reference"

    # Sanity check against the pure-f32 (PyTorch-semantics) reference; the
    # only deviation is bf16 MXU operand rounding.
    ref_f32 = mlp_reference(x, params)
    assert jnp.allclose(out, ref_f32, atol=5e-2, rtol=5e-2), \
        "mismatch vs f32 reference"

    print("KERNEL_OK")
</pallas_src>

<mosaic_0001>
module attributes {stable_mosaic.version = 11 : i64} {
  func.func @_mlp_fused_kernel(%arg0: i32, %arg1: memref<8x32xf32, #tpu.memory_space<vmem>>, %arg2: memref<32x32xbf16, #tpu.memory_space<vmem>>, %arg3: memref<1x32xf32, #tpu.memory_space<vmem>>, %arg4: memref<32x32xbf16, #tpu.memory_space<vmem>>, %arg5: memref<1x32xf32, #tpu.memory_space<vmem>>, %arg6: memref<32x128xbf16, #tpu.memory_space<vmem>>, %arg7: memref<1x128xf32, #tpu.memory_space<vmem>>, %arg8: memref<8x128xf32, #tpu.memory_space<vmem>>) attributes {dimension_semantics = [#tpu.dimension_semantics<parallel>], iteration_bounds = array<i64: 2>, scalar_prefetch = 0 : i64, scratch_operands = 0 : i64, tpu.core_type = #tpu.core_type<tc>, window_params = [{transform_indices = @transform_0, window_bounds = array<i64: 8, 32>}, {pipeline_mode = #tpu.pipeline_mode<synchronous>, transform_indices = @transform_1, window_bounds = array<i64: 32, 32>}, {pipeline_mode = #tpu.pipeline_mode<synchronous>, transform_indices = @transform_2, window_bounds = array<i64: 1, 32>}, {pipeline_mode = #tpu.pipeline_mode<synchronous>, transform_indices = @transform_3, window_bounds = array<i64: 32, 32>}, {pipeline_mode = #tpu.pipeline_mode<synchronous>, transform_indices = @transform_4, window_bounds = array<i64: 1, 32>}, {pipeline_mode = #tpu.pipeline_mode<synchronous>, transform_indices = @transform_5, window_bounds = array<i64: 32, 128>}, {pipeline_mode = #tpu.pipeline_mode<synchronous>, transform_indices = @transform_6, window_bounds = array<i64: 1, 128>}, {transform_indices = @transform_7, window_bounds = array<i64: 8, 128>}]} {
    %c0 = arith.constant 0 : index
    %c0_0 = arith.constant 0 : index
    %0 = vector.load %arg1[%c0, %c0_0] : memref<8x32xf32, #tpu.memory_space<vmem>>, vector<8x32xf32>
    %c0_1 = arith.constant 0 : index
    %c0_2 = arith.constant 0 : index
    %1 = vector.load %arg2[%c0_1, %c0_2] : memref<32x32xbf16, #tpu.memory_space<vmem>>, vector<32x32xbf16>
    %c0_3 = arith.constant 0 : index
    %c0_4 = arith.constant 0 : index
    %2 = vector.load %arg3[%c0_3, %c0_4] : memref<1x32xf32, #tpu.memory_space<vmem>>, vector<1x32xf32>
    %3 = arith.truncf %0 : vector<8x32xf32> to vector<8x32xbf16>
    %cst = arith.constant dense<0.000000e+00> : vector<8x32xf32>
    %4 = tpu.matmul %3, %1, %cst {dimension_numbers = #tpu.dot_dimension_numbers<[1], [0], [0], [1], [0, 0, 1, 1], [], []>} : vector<8x32xbf16>, vector<32x32xbf16>, vector<8x32xf32> -> vector<8x32xf32>
    %5 = vector.broadcast %2 : vector<1x32xf32> to vector<8x32xf32>
    %6 = arith.addf %4, %5 : vector<8x32xf32>
    %cst_5 = arith.constant 0.000000e+00 : f32
    %7 = vector.broadcast %cst_5 : f32 to vector<8x32xf32>
    %8 = arith.maximumf %6, %7 : vector<8x32xf32>
    %c0_6 = arith.constant 0 : index
    %c0_7 = arith.constant 0 : index
    %9 = vector.load %arg4[%c0_6, %c0_7] : memref<32x32xbf16, #tpu.memory_space<vmem>>, vector<32x32xbf16>
    %c0_8 = arith.constant 0 : index
    %c0_9 = arith.constant 0 : index
    %10 = vector.load %arg5[%c0_8, %c0_9] : memref<1x32xf32, #tpu.memory_space<vmem>>, vector<1x32xf32>
    %11 = arith.truncf %8 : vector<8x32xf32> to vector<8x32xbf16>
    %cst_10 = arith.constant dense<0.000000e+00> : vector<8x32xf32>
    %12 = tpu.matmul %11, %9, %cst_10 {dimension_numbers = #tpu.dot_dimension_numbers<[1], [0], [0], [1], [0, 0, 1, 1], [], []>} : vector<8x32xbf16>, vector<32x32xbf16>, vector<8x32xf32> -> vector<8x32xf32>
    %13 = vector.broadcast %10 : vector<1x32xf32> to vector<8x32xf32>
    %14 = arith.addf %12, %13 : vector<8x32xf32>
    %cst_11 = arith.constant 0.000000e+00 : f32
    %15 = vector.broadcast %cst_11 : f32 to vector<8x32xf32>
    %16 = arith.maximumf %14, %15 : vector<8x32xf32>
    %c0_12 = arith.constant 0 : index
    %c0_13 = arith.constant 0 : index
    %17 = vector.load %arg6[%c0_12, %c0_13] : memref<32x128xbf16, #tpu.memory_space<vmem>>, vector<32x128xbf16>
    %c0_14 = arith.constant 0 : index
    %c0_15 = arith.constant 0 : index
    %18 = vector.load %arg7[%c0_14, %c0_15] : memref<1x128xf32, #tpu.memory_space<vmem>>, vector<1x128xf32>
    %19 = arith.truncf %16 : vector<8x32xf32> to vector<8x32xbf16>
    %cst_16 = arith.constant dense<0.000000e+00> : vector<8x128xf32>
    %20 = tpu.matmul %19, %17, %cst_16 {dimension_numbers = #tpu.dot_dimension_numbers<[1], [0], [0], [1], [0, 0, 1, 1], [], []>} : vector<8x32xbf16>, vector<32x128xbf16>, vector<8x128xf32> -> vector<8x128xf32>
    %21 = vector.broadcast %18 : vector<1x128xf32> to vector<8x128xf32>
    %22 = arith.addf %20, %21 : vector<8x128xf32>
    %c0_17 = arith.constant 0 : index
    %c0_18 = arith.constant 0 : index
    %23 = vector.load %arg8[%c0_17, %c0_18] : memref<8x128xf32, #tpu.memory_space<vmem>>, vector<8x128xf32>
    tpu.vector_store %arg8[%c0_17, %c0_18], %22 {strides = array<i32>} : memref<8x128xf32, #tpu.memory_space<vmem>>, vector<8x128xf32>,
    return
  }
  func.func @transform_0(%arg0: i32) -> (i32, i32) {
    %c0_i32 = arith.constant 0 : i32
    %c0_i32_0 = arith.constant 0 : i32
    return %arg0, %c0_i32 : i32, i32
  }
  func.func @transform_1(%arg0: i32) -> (i32, i32) {
    %c0_i32 = arith.constant 0 : i32
    %c0_i32_0 = arith.constant 0 : i32
    %c0_i32_1 = arith.constant 0 : i32
    return %c0_i32, %c0_i32_0 : i32, i32
  }
  func.func @transform_2(%arg0: i32) -> (i32, i32) {
    %c0_i32 = arith.constant 0 : i32
    %c0_i32_0 = arith.constant 0 : i32
    %c0_i32_1 = arith.constant 0 : i32
    return %c0_i32, %c0_i32_0 : i32, i32
  }
  func.func @transform_3(%arg0: i32) -> (i32, i32) {
    %c0_i32 = arith.constant 0 : i32
    %c0_i32_0 = arith.constant 0 : i32
    %c0_i32_1 = arith.constant 0 : i32
    return %c0_i32, %c0_i32_0 : i32, i32
  }
  func.func @transform_4(%arg0: i32) -> (i32, i32) {
    %c0_i32 = arith.constant 0 : i32
    %c0_i32_0 = arith.constant 0 : i32
    %c0_i32_1 = arith.constant 0 : i32
    return %c0_i32, %c0_i32_0 : i32, i32
  }
  func.func @transform_5(%arg0: i32) -> (i32, i32) {
    %c0_i32 = arith.constant 0 : i32
    %c0_i32_0 = arith.constant 0 : i32
    %c0_i32_1 = arith.constant 0 : i32
    return %c0_i32, %c0_i32_0 : i32, i32
  }
  func.func @transform_6(%arg0: i32) -> (i32, i32) {
    %c0_i32 = arith.constant 0 : i32
    %c0_i32_0 = arith.constant 0 : i32
    %c0_i32_1 = arith.constant 0 : i32
    return %c0_i32, %c0_i32_0 : i32, i32
  }
  func.func @transform_7(%arg0: i32) -> (i32, i32) {
    %c0_i32 = arith.constant 0 : i32
    %c0_i32_0 = arith.constant 0 : i32
    return %arg0, %c0_i32 : i32, i32
  }
}

</mosaic_0001>

<bundles_post_ra>
// kernel: _lambda_.1
= control target key start
LH: loop header
LB: loop body
LE: loop exit
PB: predicated region body
PF: predicated region fallthrough
CT: control target
= control target key end

     0   :  { %12 = vsyncpa [#allocation3], 0  ;;  %s1108_s0 = inlined_call_operand.hbm [shape: f32[16,32], index: 0, kind: input, shape index: {}]   ;;  %s1109_s1 = inlined_call_operand.hbm [shape: bf16[32,32], index: 1, kind: input, shape index: {}]   ;;  %s1110_s2 = inlined_call_operand.hbm [shape: f32[1,32], index: 2, kind: input, shape index: {}]   ;;  %s1111_s3 = inlined_call_operand.vmem [shape: bf16[32,32], index: 3, kind: input, shape index: {}]   ;;  %s1112_s4 = inlined_call_operand.vmem [shape: f32[1,32], index: 4, kind: input, shape index: {}]   ;;  %s1113_s5 = inlined_call_operand.vmem [shape: bf16[32,128], index: 5, kind: input, shape index: {}]   ;;  %s1114_s6 = inlined_call_operand.vmem [shape: f32[1,128], index: 6, kind: input, shape index: {}]   ;;  %s1115_s7 = inlined_call_operand.vmem [shape: f32[16,128], index: 7, kind: output, shape index: {}]  }
   0x1   :  { %14 = vsyncpa [#allocation3 + $0x1], 0 }
   0x2   :  { %15 = vsyncpa [#allocation5], 0  ;;  %s914_s24 = smov 0   ;;  %s916_s25 = smov 0  }
   0x3   :  { %s918_s26 = smov 0   ;;  %s920_s27 = smov 0  }
   0x4 LB: > { %s933_s28 = sadd.s32 4294967295, %s865_s27   ;;  %p41_p0 = scmp.ne.s32.totalorder %s857_s25, %s853_s24  ;;  %s865_s27 = sphi %s920_s27, %s1131_s27   ;;  %s861_s26 = sphi %s918_s26, %s1130_s26   ;;  %s857_s25 = sphi %s916_s25, %s1129_s25   ;;  %s853_s24 = sphi %s914_s24, %s1128_s24  }
   0x5   : > { %p1116_p1 = scmp.eq.s32.totalorder %s933_s28, 0  ;;  %p613_p2 = scmp.ge.s32.totalorder %s865_s27, 1 }
   0x6   : > { %p204_p3 = scmp.lt.s32.totalorder %s865_s27, 3  ;;  %s867_s8 = smov [#allocation4]  }
   0x7   : > { %p941_p4 = por %p1116_p1, %p41_p0  ;;  %s216_s9 = sshll.u32 %s867_s8, 4  ;;  %s217_s9 = int_to_ptr.vmem [resolvable:$true] %s216_s9 }
   0x8   : > { %p945_p5 = pnand %p613_p2, %p204_p3  ;;  %s868_s11 = smov [#allocation6]  }
   0x9   : > { %s1119_s29 = scalar_select %p941_p4, 1, 0 }
   0xa   : > { %s1120_s30 = scalar_select %p945_p5, 1, 0 }
   0xb   : > { %p681_p6 = pneg %p945_p5  ;;  %s230_s12 = sshll.u32 %s868_s11, 4  ;;  %s957_s12 = int_to_ptr.vmem [resolvable:$true] %s230_s12 }
   0xc   : > { %s741_s15 = scalar_lea.hbm %s1109_s1, 256 }
   0xd   : > { %p953_p7 = pnand %p681_p6, %p1116_p1  ;;  %p742_p8 = scmp.ne.s32.totalorder %s1109_s1, %s741_s15 }
   0xe   : > { %p748_p12 = scmp.lt.u32.totalorder %s741_s15, %s1109_s1 }
   0xf   : > { %p743_p9 = pneg %p953_p7 }
  0x11   : > { %p744_p10 = pnand %p743_p9, %p742_p8 }
  0x13   : > { %p745_p11 = pneg %p744_p10 }
  0x15   : > { %p750_p13 = pnand %p748_p12, %p745_p11 }
  0x17   : > { %753 = shalt.err (!%p750_p13)
}
  0x18   : > { %s754_s20 = scalar_lea.vmem %s217_s9, 256  ;;  %p762_p6 = scmp.lt.s32.totalorder %s217_s9, %s217_s9 }
  0x19   : > { %p755_p0 = scmp.ne.s32.totalorder %s217_s9, %s754_s20  ;;  %p763_p1 = scmp.lt.s32.totalorder %s754_s20, %s754_s20 }
  0x1b   : > { %p757_p2 = pnand %p755_p0, %p743_p9  ;;  %p764_p4 = por %p763_p1, %p762_p6 }
  0x1d   : > { %p758_p3 = pneg %p757_p2 }
  0x1f   : > { %p765_p5 = pnand %p764_p4, %p758_p3 }
  0x21   : > { %768 = shalt.err (!%p765_p5)
}
  0x22   : > { %s869_s21 = smov 64   ;;  %s870_s22 = smov 4  }
  0x23   : > { %684 = dma.hbm_to_vmem [thread:$0]  (!%p953_p7), %s1109_s1, 256, %s217_s9, [#allocation5], %s869_s21, %s869_s21, %s870_s22  }
  0x24   : > { %s769_s13 = scalar_lea.hbm %s1110_s2, 16 }
  0x25   : > { %p770_p8 = scmp.ne.s32.totalorder %s1110_s2, %s769_s13  ;;  %p776_p5 = scmp.lt.u32.totalorder %s769_s13, %s1110_s2 }
  0x27   : > { %p772_p1 = pnand %p770_p8, %p743_p9 }
  0x29   : > { %p773_p4 = pneg %p772_p1 }
  0x2b   : > { %p778_p10 = pnand %p776_p5, %p773_p4 }
  0x2d   : > { %781 = shalt.err (!%p778_p10)
}
  0x2e   : > { %s782_s9 = scalar_lea.vmem %s957_s12, 16  ;;  %s789_s18 = scalar_lea.vmem %s957_s12, 32 }
  0x2f   : > { %p783_p11 = scmp.ne.s32.totalorder %s957_s12, %s782_s9  ;;  %p790_p0 = scmp.lt.s32.totalorder %s957_s12, %s957_s12 }
  0x30   : > { %p791_p2 = scmp.lt.s32.totalorder %s789_s18, %s782_s9 }
  0x31   : > { %p785_p12 = pnand %p783_p11, %p743_p9 }
  0x32   : > { %p792_p3 = por %p791_p2, %p790_p0 }
  0x33   : > { %p786_p13 = pneg %p785_p12 }
  0x35   : > { %p793_p6 = pnand %p792_p3, %p786_p13 }
  0x37   : > { %796 = shalt.err (!%p793_p6)
}
  0x38   : > { %687 = dma.hbm_to_vmem [thread:$0]  (!%p953_p7), %s1110_s2, 16, %s957_s12, [#allocation5]  }
  0x39   : > { %s1008_s21 = sadd.s32 1, %s865_s27   ;;  %s28_s22 = sadd.s32 1, %s861_s26 }
  0x3a   : > { %s25_s10 = ssub.s32 %s865_s27, %s1008_s21  ;;  %p35_p9 = scmp.ne.s32.totalorder %s861_s26, %s857_s25 }
  0x3b   : > { %p26_p8 = scmp.eq.s32.totalorder %s25_s10, 0  ;;  %p36_p1 = scmp.eq.s32.totalorder %s865_s27, 0 }
  0x3c   : > { %p694_p4 = scmp.lt.s32.totalorder %s865_s27, 2  ;;  %s253_s23 = sand.u32 1, %s861_s26  }
  0x3d   : > { %s1019_s24 = scalar_select %p26_p8, %s861_s26, %s28_s22  }
  0x3e   : > { %p37_p5 = por %p36_p1, %p35_p9  ;;  %s617_s8 = sshll.u32 %s253_s23, 3 }
  0x3f   : > { %s618_s11 = sshll.u32 %s865_s27, 7  ;;  %s257_s12 = scalar_lea.vmem [#allocation2], %s617_s8 }
  0x40   : > { %s1025_s15 = scalar_lea.hbm %s1108_s0, %s618_s11  ;;  %s264_s16 = sshll.u32 %s257_s12, 4  ;;  %s1031_s16 = int_to_ptr.vmem [resolvable:$true] %s264_s16 }
  0x41   : > { %p1027_p7 = pnand %p694_p4, %p37_p5  ;;  %s254_s27 = scalar_lea.sflag [#allocation3], %s253_s23 }
  0x42   : > { %s797_s9 = scalar_lea.hbm %s1025_s15, 128  ;;  %s802_s20 = scalar_lea.hbm %s1108_s0, 256 }
  0x43   : > { %p798_p10 = scmp.ne.s32.totalorder %s1025_s15, %s797_s9  ;;  %p799_p11 = pneg %p1027_p7 }
  0x44   : > { %p803_p0 = scmp.lt.u32.totalorder %s1025_s15, %s1108_s0  ;;  %p804_p2 = scmp.lt.u32.totalorder %s802_s20, %s797_s9 }
  0x45   : > { %p800_p12 = pnand %p799_p11, %p798_p10  ;;  %p806_p6 = scmp.lt.u32.totalorder %s797_s9, %s1025_s15 }
  0x46   : > { %p805_p3 = por %p804_p2, %p803_p0 }
  0x47   : > { %p801_p13 = pneg %p800_p12 }
  0x48   : > { %p807_p9 = por %p806_p6, %p805_p3 }
  0x4a   : > { %p808_p8 = pnand %p807_p9, %p801_p13 }
  0x4c   : > { %811 = shalt.err (!%p808_p8)
}
  0x4d   : > { %s812_s23 = scalar_lea.vmem %s1031_s16, 128  ;;  %s871_s8 = smov [#allocation2]  }
  0x4e   : > { %p813_p1 = scmp.ne.s32.totalorder %s1031_s16, %s812_s23  ;;  %s817_s11 = sshll.u32 %s871_s8, 4  ;;  %s818_s11 = int_to_ptr.vmem [resolvable:$false] %s817_s11 }
  0x4f   : > { %s819_s13 = scalar_lea.vmem %s818_s11, 256  ;;  %p820_p10 = scmp.lt.s32.totalorder %s1031_s16, %s818_s11 }
  0x50   : > { %p815_p4 = pnand %p813_p1, %p799_p11  ;;  %p821_p12 = scmp.lt.s32.totalorder %s819_s13, %s812_s23 }
  0x52   : > { %p816_p5 = pneg %p815_p4  ;;  %p822_p0 = por %p821_p12, %p820_p10 }
  0x54   : > { %p823_p2 = pnand %p822_p0, %p816_p5 }
  0x56   : > { %826 = shalt.err (!%p823_p2)
}
  0x57   : > { %691 = dma.hbm_to_vmem [thread:$0]  (!%p1027_p7), %s1025_s15, 128, %s1031_s16, %s254_s27  }
  0x58   : > { %p1123_p13 = scmp.ne.s32.totalorder %s1120_s30, 0 }
  0x59   : > { %s275_s14 = sand.u32 (!%p1123_p13), 1, %s857_s25   ;;  %p1124_p11 = scmp.ne.s32.totalorder (!%p1123_p13), %s1119_s29, 0 }
  0x5a   : > { %273 = sbr.rel (%p1123_p13) target bundleno = 762 (0x2fa), region = 48  ;;  %s620_s12 = sshll.u32 (!%p1123_p13), %s275_s14, 3 }
  0x5b   : > { %s276_s9 = scalar_lea.sflag (!%p1123_p13), [#allocation3], %s275_s14  ;;  %s279_s18 = scalar_lea.vmem (!%p1123_p13), [#allocation2], %s620_s12 }
  0x61   : > { %844 = dma.done.wait (%p1124_p11), %s276_s9, 128  }
  0x62   : > { %846 = vsyncadd (%p1124_p11), %s276_s9, 4294967168  ;;  %p1125_p3 = scmp.eq.s32.totalorder %s933_s28, 0 }
  0x64   : > { %848 = dma.done.wait (%p1125_p3), [#allocation5], 272   ;;  %p1126_p6 = pmov %p1125_p3 }
  0x65   : > { %v872_v0 = vmov 0.0   ;;  %vm873_vm0 = vmmov 0   ;;  %v735_v1 = vld [vmem:[#allocation4] sm:$0xff]   ;;  %v736_v2 = vld [vmem:[#allocation4 + $0x8] sm:$0xff]   ;;  %v322_v3 = vld [vmem:[%s279_s18] sm:$0xff]  ;;  %vm347_vm1 = vcmask 261120  }
  0x66   : > { %850 = vsyncadd (%p1126_p6), [#allocation5], 4294967024  ;;  %647 = vmatprep.subr.bf16.mxu0 %v872_v0  ;;  %651 = vmatprep.mubr.msk.bf16.mxu0 %vm873_vm0, %v872_v0  ;;  %v328_v4 = vpack.c.bf16 %v322_v3, %v322_v3  ;;  %v737_v5 = vld [vmem:[%s1111_s3] sm:$0xff]   ;;  %v738_v6 = vld [vmem:[%s1111_s3 + $0x8] sm:$0xff]   ;;  %p317_p7 = scmp.lt.s32.totalorder %s933_s28, 1 }
  0x67   : > { %655 = vmatprep.subr.bf16.mxu1 %v872_v0  ;;  %659 = vmatprep.mubr.msk.bf16.mxu1 %vm873_vm0, %v872_v0  ;;  %v739_v7 = vld [vmem:[%s1113_s5] sm:$0xff]   ;;  %v740_v16 = vld [vmem:[%s1113_s5 + $0x8] sm:$0xff]  }
  0x68   : > { %648 = vmatpush3.bf16.msra.mxu0 %v735_v1  ;;  %656 = vmatpush3.bf16.msra.mxu1 %v737_v5  ;;  %v624_v8 = vld [vmem:[#allocation6] ss:$0 sm:$0xff]  ;;  %s1133_s28 = smov (!%p317_p7, %s933_s28), 1 }
  0x69   : > { %649 = vmatprep.subr.bf16.mxu0 %v872_v0  ;;  %657 = vmatprep.subr.bf16.mxu1 %v872_v0  ;;  %v628_v17 = vld [vmem:[%s1112_s4] ss:$0 sm:$0xff]  ;;  %s623_s23 = sshll.u32 %s1133_s28, 3 }
  0x6a   : > { %v632_v25 = vld [vmem:[%s1114_s6] ss:$0 sm:$0xff]  ;;  %s320_s12 = scalar_lea.vmem %s1115_s7, %s623_s23 }
  0x6c   : > { %650 = vmatpush3.bf16.msra.mxu0 %v736_v2  ;;  %658 = vmatpush3.bf16.msra.mxu1 %v738_v6 }
  0x6d   : > { %663 = vmatprep.subr.bf16.mxu0 %v872_v0 }
  0x6f   : > { %652 = vmatmul.mubr.msk.bf16.vlgmr.msra.gmra.mrb[0].mxu0 %vm347_vm1, %v328_v4 }
  0x70   : > { %667 = vmatprep.mubr.msk.bf16.mxu0 %vm873_vm0, %v872_v0  ;;  %664 = vmatpush3.bf16.msra.mxu0 %v739_v7 }
  0x71   : > { %665 = vmatprep.subr.bf16.mxu0 %v872_v0 }
  0x74   : > { %666 = vmatpush3.bf16.msra.mxu0 %v740_v16 }
 0x142   : > { %v385_v9 = vpop.f32.mrb[0].mxu0 }
 0x143   : > { %v386_v10 = vadd.f32 %v624_v8, %v385_v9  ;;  %v653_v11 = vpop.f32.mrb[1].mxu0 }
 0x144   : > { %v388_v12 = vpop.f32.mrb[2].mxu0 }
 0x145   : > { %v391_v13 = vmax.f32 %v386_v10, 0.0  ;;  %v654_v14 = vpop.f32.mrb[3].mxu0 }
 0x147   : > { %v397_v15 = vpack.c.bf16 %v391_v13, %v391_v13 }
 0x149   : > { %660 = vmatmul.mubr.msk.bf16.vlgmr.msra.gmra.mrb[0].mxu1 %vm347_vm1, %v397_v15 }
 0x21c   : > { %v453_v18 = vpop.f32.mrb[0].mxu1 }
 0x21d   : > { %v454_v19 = vadd.f32 %v628_v17, %v453_v18  ;;  %v661_v20 = vpop.f32.mrb[1].mxu1 }
 0x21e   : > { %v456_v21 = vpop.f32.mrb[2].mxu1 }
 0x21f   : > { %v459_v22 = vmax.f32 %v454_v19, 0.0  ;;  %v662_v23 = vpop.f32.mrb[3].mxu1 }
 0x221   : > { %v465_v24 = vpack.c.bf16 %v459_v22, %v459_v22 }
 0x223   : > { %668 = vmatmul.mubr.msk.bf16.vlgmr.msra.gmra.mrb[4].mxu0 %vm347_vm1, %v465_v24 }
 0x2f6   : > { %v521_v26 = vpop.f32.mrb[4].mxu0 }
 0x2f7   : > { %v522_v27 = vadd.f32 %v632_v25, %v521_v26  ;;  %v669_v28 = vpop.f32.mrb[5].mxu0 }
 0x2f8   : > { %v524_v29 = vpop.f32.mrb[6].mxu0 }
 0x2f9   : > { %527 = vst [vmem:[%s320_s12] sm:$0xff] %v522_v27  ;;  %v670_v30 = vpop.f32.mrb[7].mxu0 }
 0x2fa PF: > { %s1127_s9 = smov %s1019_s24  ;;  %p18_p9 = scmp.ge.s32.totalorder %s1008_s21, 4  }
 0x2fb   : > { %s1128_s24 = smov %s857_s25  ;;  %s1129_s25 = smov %s861_s26 }
 0x2fc   : > { %s1130_s26 = smov %s1127_s9  ;;  %s1131_s27 = smov %s1008_s21 }
 0x2fd   :  { %20 = sbr.rel (!%p18_p9) target bundleno = 4 (0x4), region = 96 }
 0x304   :  { %547 = vsyncpa [#allocation3], 1 }
 0x305   :  { %549 = vsyncpa [#allocation3 + $0x1], 1 }
 0x306   :  { %550 = vsyncpa [#allocation5], 1 }

</bundles_post_ra>
